<compile_context>
chip_gen: v6e
topology: v6e:2x2x1
jax: 0.10.0
libtpu: 0.0.40
codegen_flags: <defaults>
</compile_context>

<pallas_src>
import functools

import jax
import jax.numpy as jnp
from jax.experimental import pallas as pl
from jax.experimental.pallas import tpu as pltpu


def _round_up(x, m):
    return ((x + m - 1) // m) * m


# -----------------------------------------------------------------------------
# Kernel: one invocation per (batch tile, time chunk).  gates_ref holds the
# bf16 hoisted input projection X @ W_ih^T for this chunk; the serial path per
# timestep is a single (Bt, H) @ (H, 4H) recurrent matmul + gate nonlinearities.
# -----------------------------------------------------------------------------
def lstm_classify_kernel(maxlen_ref,   # SMEM (1,) int32   (scalar prefetch)
                         gates_ref,    # VMEM (Tc, Bt, 4H) bf16 = X @ W_ih^T
                         lens_ref,     # VMEM (Bt, 1) int32
                         bias_ref,     # VMEM (1, 4H) f32  = b_ih + b_hh
                         whh_ref,      # VMEM (H, 4H) bf16 = W_hh^T
                         wfc_ref,      # VMEM (H, C)  bf16 = W_fc^T
                         bfc_ref,      # VMEM (1, C)  f32
                         out_ref,      # VMEM (Bt, C) f32
                         h_scr,        # VMEM (Bt, H) f32 scratch (persists)
                         c_scr):       # VMEM (Bt, H) f32 scratch (persists)
    Tc, Bt, H4 = gates_ref.shape
    H = H4 // 4
    t_idx = pl.program_id(1)

    # ---- init carried state at the first time chunk of this batch tile -----
    @pl.when(t_idx == 0)
    def _():
        h_scr[...] = jnp.zeros_like(h_scr)
        c_scr[...] = jnp.zeros_like(c_scr)

    lens = lens_ref[...]                       # (Bt, 1) int32
    bias = bias_ref[...]                       # (1, 4H) f32

    chunk_start = t_idx * Tc
    # only run the steps some real sequence still needs (scalar-prefetched max)
    n_valid = jnp.clip(maxlen_ref[0] - chunk_start, 0, Tc)

    def step(tt, carry):
        h = h_scr[...]
        c = c_scr[...]
        # recurrent projection only; input projection was hoisted to the
        # wrapper (bf16 stream) and the bias is re-added here in f32.
        gates = (gates_ref[tt].astype(jnp.float32) + bias
                 + jnp.dot(h.astype(jnp.bfloat16), whh_ref[...],
                           preferred_element_type=jnp.float32))
        # PyTorch gate order: i, f, g, o
        i_g = jax.nn.sigmoid(gates[:, 0 * H:1 * H])
        f_g = jax.nn.sigmoid(gates[:, 1 * H:2 * H])
        g_g = jnp.tanh(gates[:, 2 * H:3 * H])
        o_g = jax.nn.sigmoid(gates[:, 3 * H:4 * H])
        c_new = f_g * c + i_g * g_g
        h_new = o_g * jnp.tanh(c_new)
        # packed-sequence semantics: freeze (h, c) once t >= length[b]
        live = (chunk_start + tt) < lens       # (Bt, 1) bool -> 2 vsel / step
        h_scr[...] = jnp.where(live, h_new, h)
        c_scr[...] = jnp.where(live, c_new, c)
        return carry

    jax.lax.fori_loop(0, n_valid, step, 0)

    # ---- fused classifier head on the final hidden state (last chunk) ------
    @pl.when(t_idx == pl.num_programs(1) - 1)
    def _():
        h_last = h_scr[...]
        logits = jnp.dot(h_last.astype(jnp.bfloat16), wfc_ref[...],
                         preferred_element_type=jnp.float32) + bfc_ref[...]
        act = jnp.where(logits >= 0.0, logits, 0.01 * logits)   # leaky_relu
        m = jnp.max(act, axis=-1, keepdims=True)
        e = jnp.exp(act - m)
        out_ref[...] = e / jnp.sum(e, axis=-1, keepdims=True)


def lstm_classify_forward(tokens, lengths, emb_table,
                          w_ih, w_hh, b_ih, b_hh, w_fc, b_fc,
                          *, b_tile=None, t_chunk=None):
    """tokens: (B, T) int32, lengths: (B,) int32.  Returns (B, C) softmax."""
    B, T = tokens.shape
    H = w_hh.shape[1]            # w_hh: (4H, H) torch layout
    C = w_fc.shape[0]            # w_fc: (C, H) torch layout
    H4 = 4 * H

    # Batch tile: target 256 rows so the serialized recurrent matmul fills the
    # MXU M dimension, but never pad a tiny batch past its 8-aligned size.
    if b_tile is None:
        b_tile = min(256, _round_up(B, 8))
    b_tile = max(8, _round_up(b_tile, 8))
    B_pad = _round_up(B, b_tile)
    n_btiles = B_pad // b_tile

    # Time chunk: ~8 MiB of bf16 gates per buffer (the BlockSpec pipeline
    # double-buffers it) keeps the working set well inside v7x's 64 MiB VMEM
    # while overlapping the gate stream with the recurrence.
    if t_chunk is None:
        step_bytes = b_tile * H4 * 2                      # one bf16 gate row
        t_chunk = max(1, min(T, (8 * 1024 * 1024) // max(step_bytes, 1)))
    t_chunk = max(1, min(int(t_chunk), T))
    T_pad = _round_up(T, t_chunk)
    n_tchunks = T_pad // t_chunk

    pad_b = B_pad - B
    pad_t = T_pad - T
    tokens_p = jnp.pad(tokens, ((0, pad_b), (0, pad_t)))
    lengths_p = jnp.pad(jnp.asarray(lengths, jnp.int32), (0, pad_b))

    # --- glue (XLA): time-major gather + hoisted input projection (bf16) ----
    # Gather time-major directly so no (B, T, 4H) tensor is ever transposed;
    # only the small (T, B) id matrix is.
    emb_tbe = jnp.take(emb_table, tokens_p.T, axis=0)             # (T_pad, B_pad, E)
    wih_t = jnp.transpose(w_ih).astype(jnp.bfloat16)              # (E, 4H)
    gates_tbf = jnp.dot(emb_tbe.astype(jnp.bfloat16), wih_t,
                        preferred_element_type=jnp.float32)
    gates_tbf = gates_tbf.astype(jnp.bfloat16)                    # bf16 HBM stream

    whh_t = jnp.transpose(w_hh).astype(jnp.bfloat16)              # (H, 4H)
    wfc_t = jnp.transpose(w_fc).astype(jnp.bfloat16)              # (H, C)
    bias = (b_ih + b_hh).reshape(1, H4).astype(jnp.float32)       # (1, 4H)
    bfc2d = b_fc.reshape(1, C).astype(jnp.float32)                # (1, C)
    lens2d = lengths_p.reshape(B_pad, 1)                          # (B_pad, 1)
    max_len = jnp.max(lengths_p, keepdims=True).astype(jnp.int32)  # (1,) SMEM

    grid_spec = pltpu.PrefetchScalarGridSpec(
        num_scalar_prefetch=1,
        grid=(n_btiles, n_tchunks),
        in_specs=[
            pl.BlockSpec((t_chunk, b_tile, H4), lambda b, t, ml: (t, b, 0)),
            pl.BlockSpec((b_tile, 1), lambda b, t, ml: (b, 0)),
            pl.BlockSpec((1, H4), lambda b, t, ml: (0, 0)),
            pl.BlockSpec((H, H4), lambda b, t, ml: (0, 0)),
            pl.BlockSpec((H, C), lambda b, t, ml: (0, 0)),
            pl.BlockSpec((1, C), lambda b, t, ml: (0, 0)),
        ],
        out_specs=pl.BlockSpec((b_tile, C), lambda b, t, ml: (b, 0)),
        scratch_shapes=[pltpu.VMEM((b_tile, H), jnp.float32),   # h carry
                        pltpu.VMEM((b_tile, H), jnp.float32)],  # c carry
    )

    out = pl.pallas_call(
        lstm_classify_kernel,
        out_shape=jax.ShapeDtypeStruct((B_pad, C), jnp.float32),
        grid_spec=grid_spec,
        compiler_params=pltpu.CompilerParams(
            # batch tiles -> TensorCores; time chunks are the carried axis
            dimension_semantics=("parallel", "arbitrary"),
            # explicit scoped-VMEM budget: safely below v7x's 64 MiB physical
            # VMEM, well above the 16/32 MiB defaults on v5e/v6e.
            vmem_limit_bytes=48 * 1024 * 1024),
    )(max_len, gates_tbf, lens2d, bias, whh_t, wfc_t, bfc2d)

    return out[:B]


# -----------------------------------------------------------------------------
# Pure-JAX f32 reference (mirrors the PyTorch forward) for a correctness check.
# -----------------------------------------------------------------------------
def reference_forward(tokens, lengths, emb_table,
                      w_ih, w_hh, b_ih, b_hh, w_fc, b_fc):
    B, T = tokens.shape
    H = w_hh.shape[1]
    embedded = jnp.take(emb_table, tokens, axis=0)            # (B, T, E)
    bias = b_ih + b_hh

    def step(carry, t):
        h, c = carry
        x_t = embedded[:, t, :]
        gates = x_t @ w_ih.T + h @ w_hh.T + bias
        i_g = jax.nn.sigmoid(gates[:, 0 * H:1 * H])
        f_g = jax.nn.sigmoid(gates[:, 1 * H:2 * H])
        g_g = jnp.tanh(gates[:, 2 * H:3 * H])
        o_g = jax.nn.sigmoid(gates[:, 3 * H:4 * H])
        c_new = f_g * c + i_g * g_g
        h_new = o_g * jnp.tanh(c_new)
        live = (t < lengths)[:, None]
        h = jnp.where(live, h_new, h)
        c = jnp.where(live, c_new, c)
        return (h, c), None

    h0 = jnp.zeros((B, H), jnp.float32)
    c0 = jnp.zeros((B, H), jnp.float32)
    (h_last, _), _ = jax.lax.scan(step, (h0, c0), jnp.arange(T))
    logits = h_last @ w_fc.T + b_fc
    act = jnp.where(logits >= 0.0, logits, 0.01 * logits)
    return jax.nn.softmax(act, axis=-1)


if __name__ == "__main__":
    # Small synthetic config: vocab=100, emb=16, lstm_dims=32 (4H = 128 lanes),
    # 1 layer, unidirectional, class_num=5, batch=2, seq=8.
    VOCAB, E, H, C = 100, 16, 32, 5
    B, T = 2, 8

    key = jax.random.PRNGKey(0)
    ks = jax.random.split(key, 8)

    emb_table = jax.random.normal(ks[0], (VOCAB, E), jnp.float32) * 0.1
    w_ih = jax.random.normal(ks[1], (4 * H, E), jnp.float32) * 0.1
    w_hh = jax.random.normal(ks[2], (4 * H, H), jnp.float32) * 0.1
    b_ih = jax.random.normal(ks[3], (4 * H,), jnp.float32) * 0.1
    b_hh = jax.random.normal(ks[4], (4 * H,), jnp.float32) * 0.1
    w_fc = jax.random.normal(ks[5], (C, H), jnp.float32) * 0.1
    b_fc = jax.random.normal(ks[6], (C,), jnp.float32) * 0.1

    tokens = jax.random.randint(ks[7], (B, T), 0, VOCAB, jnp.int32)
    lengths = jnp.array([T, 5], jnp.int32)   # variable-length sequences

    # t_chunk=4 so the tiny test exercises the multi-chunk init/head paths.
    forward = jax.jit(functools.partial(lstm_classify_forward, t_chunk=4))
    out = forward(tokens, lengths, emb_table,
                  w_ih, w_hh, b_ih, b_hh, w_fc, b_fc)
    out = jax.block_until_ready(out)

    ref = reference_forward(tokens, lengths, emb_table,
                            w_ih, w_hh, b_ih, b_hh, w_fc, b_fc)
    assert out.shape == (B, C)
    assert bool(jnp.all(jnp.isfinite(out)))
    assert jnp.allclose(jnp.sum(out, axis=-1), 1.0, atol=1e-3)
    # bf16 gate stream + bf16 MXU feeds (f32 accumulation) => relaxed tolerance
    # vs the f32 reference.
    assert jnp.allclose(out, ref, atol=2e-2, rtol=2e-2)
    # TODO(synk): loss_fn (cross-entropy) of the train/val path is a
    # host-provided callable in the PyTorch module and not part of the kernel;
    # only the softmax probabilities (test path) are produced here.
    print("KERNEL_OK")
</pallas_src>

<mosaic_0001>
module attributes {stable_mosaic.version = 11 : i64} {
  func.func @lstm_classify_kernel(%arg0: i32, %arg1: i32, %arg2: memref<1xi32, #tpu.memory_space<smem>>, %arg3: memref<4x8x128xbf16, #tpu.memory_space<vmem>>, %arg4: memref<8x1xi32, #tpu.memory_space<vmem>>, %arg5: memref<1x128xf32, #tpu.memory_space<vmem>>, %arg6: memref<32x128xbf16, #tpu.memory_space<vmem>>, %arg7: memref<32x5xbf16, #tpu.memory_space<vmem>>, %arg8: memref<1x5xf32, #tpu.memory_space<vmem>>, %arg9: memref<8x5xf32, #tpu.memory_space<vmem>>, %arg10: memref<8x32xf32, #tpu.memory_space<vmem>>, %arg11: memref<8x32xf32, #tpu.memory_space<vmem>>) attributes {dimension_semantics = [#tpu.dimension_semantics<parallel>, #tpu.dimension_semantics<arbitrary>], iteration_bounds = array<i64: 1, 2>, scalar_prefetch = 1 : i64, scratch_operands = 2 : i64, tpu.core_type = #tpu.core_type<tc>, window_params = [{transform_indices = @transform_0, window_bounds = array<i64: 4, 8, 128>}, {transform_indices = @transform_1, window_bounds = array<i64: 8, 1>}, {pipeline_mode = #tpu.pipeline_mode<synchronous>, transform_indices = @transform_2, window_bounds = array<i64: 1, 128>}, {pipeline_mode = #tpu.pipeline_mode<synchronous>, transform_indices = @transform_3, window_bounds = array<i64: 32, 128>}, {pipeline_mode = #tpu.pipeline_mode<synchronous>, transform_indices = @transform_4, window_bounds = array<i64: 32, 5>}, {pipeline_mode = #tpu.pipeline_mode<synchronous>, transform_indices = @transform_5, window_bounds = array<i64: 1, 5>}, {transform_indices = @transform_6, window_bounds = array<i64: 8, 5>}]} {
    %c0_i32 = arith.constant 0 : i32
    %0 = arith.cmpi eq, %arg1, %c0_i32 : i32
    %1 = arith.extui %0 : i1 to i32
    %c0_i32_0 = arith.constant 0 : i32
    %2 = arith.cmpi ne, %1, %c0_i32_0 : i32
    scf.if %2 {
      %cst = arith.constant 0.000000e+00 : f32
      %15 = vector.broadcast %cst : f32 to vector<8x32xf32>
      %c0_11 = arith.constant 0 : index
      %c0_12 = arith.constant 0 : index
      %16 = vector.load %arg10[%c0_11, %c0_12] : memref<8x32xf32, #tpu.memory_space<vmem>>, vector<8x32xf32>
      tpu.vector_store %arg10[%c0_11, %c0_12], %15 {strides = array<i32>} : memref<8x32xf32, #tpu.memory_space<vmem>>, vector<8x32xf32>,
      %cst_13 = arith.constant 0.000000e+00 : f32
      %17 = vector.broadcast %cst_13 : f32 to vector<8x32xf32>
      %c0_14 = arith.constant 0 : index
      %c0_15 = arith.constant 0 : index
      %18 = vector.load %arg11[%c0_14, %c0_15] : memref<8x32xf32, #tpu.memory_space<vmem>>, vector<8x32xf32>
      tpu.vector_store %arg11[%c0_14, %c0_15], %17 {strides = array<i32>} : memref<8x32xf32, #tpu.memory_space<vmem>>, vector<8x32xf32>,
    } else {
    }
    %c0 = arith.constant 0 : index
    %c0_1 = arith.constant 0 : index
    %3 = vector.load %arg4[%c0, %c0_1] : memref<8x1xi32, #tpu.memory_space<vmem>>, vector<8x1xi32>
    %c0_2 = arith.constant 0 : index
    %c0_3 = arith.constant 0 : index
    %4 = vector.load %arg5[%c0_2, %c0_3] : memref<1x128xf32, #tpu.memory_space<vmem>>, vector<1x128xf32>
    %c4_i32 = arith.constant 4 : i32
    %5 = arith.muli %arg1, %c4_i32 : i32
    %c0_4 = arith.constant 0 : index
    %6 = memref.load %arg2[%c0_4] : memref<1xi32, #tpu.memory_space<smem>>
    %7 = arith.subi %6, %5 : i32
    %c0_i32_5 = arith.constant 0 : i32
    %c4_i32_6 = arith.constant 4 : i32
    %8 = arith.maxsi %c0_i32_5, %7 : i32
    %9 = arith.minsi %c4_i32_6, %8 : i32
    %c0_i32_7 = arith.constant 0 : i32
    %c0_i32_8 = arith.constant 0 : i32
    %10 = arith.subi %9, %c0_i32_8 : i32
    %11 = arith.addi %c0_i32_8, %10 : i32
    %c1_i32 = arith.constant 1 : i32
    scf.for %arg12 = %c0_i32_8 to %11 step %c1_i32  : i32 {
      %c0_11 = arith.constant 0 : index
      %c0_12 = arith.constant 0 : index
      %15 = vector.load %arg10[%c0_11, %c0_12] : memref<8x32xf32, #tpu.memory_space<vmem>>, vector<8x32xf32>
      %c0_13 = arith.constant 0 : index
      %c0_14 = arith.constant 0 : index
      %16 = vector.load %arg11[%c0_13, %c0_14] : memref<8x32xf32, #tpu.memory_space<vmem>>, vector<8x32xf32>
      %17 = arith.index_cast %arg12 : i32 to index
      %c0_15 = arith.constant 0 : index
      %c0_16 = arith.constant 0 : index
      %18 = vector.load %arg3[%17, %c0_15, %c0_16] : memref<4x8x128xbf16, #tpu.memory_space<vmem>>, vector<1x8x128xbf16>
      %19 = vector.shape_cast %18 : vector<1x8x128xbf16> to vector<8x128xbf16>
      %20 = arith.extf %19 : vector<8x128xbf16> to vector<8x128xf32>
      %21 = vector.broadcast %4 : vector<1x128xf32> to vector<8x128xf32>
      %22 = arith.addf %20, %21 : vector<8x128xf32>
      %23 = arith.truncf %15 : vector<8x32xf32> to vector<8x32xbf16>
      %c0_17 = arith.constant 0 : index
      %c0_18 = arith.constant 0 : index
      %24 = vector.load %arg6[%c0_17, %c0_18] : memref<32x128xbf16, #tpu.memory_space<vmem>>, vector<32x128xbf16>
      %cst = arith.constant dense<0.000000e+00> : vector<8x128xf32>
      %25 = tpu.matmul %23, %24, %cst {dimension_numbers = #tpu.dot_dimension_numbers<[1], [0], [0], [1], [0, 0, 1, 1], [], []>} : vector<8x32xbf16>, vector<32x128xbf16>, vector<8x128xf32> -> vector<8x128xf32>
      %26 = arith.addf %22, %25 : vector<8x128xf32>
      %27 = vector.extract_strided_slice %26 {offsets = [0, 0], sizes = [8, 32], strides = [1, 1]} : vector<8x128xf32> to vector<8x32xf32>
      %28 = arith.negf %27 : vector<8x32xf32>
      %29 = math.exp %28 : vector<8x32xf32>
      %cst_19 = arith.constant 1.000000e+00 : f32
      %30 = vector.broadcast %cst_19 : f32 to vector<8x32xf32>
      %31 = arith.addf %30, %29 : vector<8x32xf32>
      %32 = arith.divf %30, %31 : vector<8x32xf32>
      %33 = vector.extract_strided_slice %26 {offsets = [0, 32], sizes = [8, 32], strides = [1, 1]} : vector<8x128xf32> to vector<8x32xf32>
      %34 = arith.negf %33 : vector<8x32xf32>
      %35 = math.exp %34 : vector<8x32xf32>
      %cst_20 = arith.constant 1.000000e+00 : f32
      %36 = vector.broadcast %cst_20 : f32 to vector<8x32xf32>
      %37 = arith.addf %36, %35 : vector<8x32xf32>
      %38 = arith.divf %36, %37 : vector<8x32xf32>
      %39 = vector.extract_strided_slice %26 {offsets = [0, 64], sizes = [8, 32], strides = [1, 1]} : vector<8x128xf32> to vector<8x32xf32>
      %40 = math.tanh %39 : vector<8x32xf32>
      %41 = vector.extract_strided_slice %26 {offsets = [0, 96], sizes = [8, 32], strides = [1, 1]} : vector<8x128xf32> to vector<8x32xf32>
      %42 = arith.negf %41 : vector<8x32xf32>
      %43 = math.exp %42 : vector<8x32xf32>
      %cst_21 = arith.constant 1.000000e+00 : f32
      %44 = vector.broadcast %cst_21 : f32 to vector<8x32xf32>
      %45 = arith.addf %44, %43 : vector<8x32xf32>
      %46 = arith.divf %44, %45 : vector<8x32xf32>
      %47 = arith.mulf %38, %16 : vector<8x32xf32>
      %48 = arith.mulf %32, %40 : vector<8x32xf32>
      %49 = arith.addf %47, %48 : vector<8x32xf32>
      %50 = math.tanh %49 : vector<8x32xf32>
      %51 = arith.mulf %46, %50 : vector<8x32xf32>
      %52 = arith.addi %5, %arg12 : i32
      %53 = vector.broadcast %52 : i32 to vector<8x1xi32>
      %54 = arith.cmpi slt, %53, %3 : vector<8x1xi32>
      %55 = vector.shape_cast %54 : vector<8x1xi1> to vector<8x1xi1>
      %56 = vector.broadcast %55 : vector<8x1xi1> to vector<8x32xi1>
      %57 = arith.select %56, %51, %15 : vector<8x32xi1>, vector<8x32xf32>
      %c0_22 = arith.constant 0 : index
      %c0_23 = arith.constant 0 : index
      %58 = vector.load %arg10[%c0_22, %c0_23] : memref<8x32xf32, #tpu.memory_space<vmem>>, vector<8x32xf32>
      tpu.vector_store %arg10[%c0_22, %c0_23], %57 {strides = array<i32>} : memref<8x32xf32, #tpu.memory_space<vmem>>, vector<8x32xf32>,
      %59 = vector.shape_cast %54 : vector<8x1xi1> to vector<8x1xi1>
      %60 = vector.broadcast %59 : vector<8x1xi1> to vector<8x32xi1>
      %61 = arith.select %60, %49, %16 : vector<8x32xi1>, vector<8x32xf32>
      %c0_24 = arith.constant 0 : index
      %c0_25 = arith.constant 0 : index
      %62 = vector.load %arg11[%c0_24, %c0_25] : memref<8x32xf32, #tpu.memory_space<vmem>>, vector<8x32xf32>
      tpu.vector_store %arg11[%c0_24, %c0_25], %61 {strides = array<i32>} : memref<8x32xf32, #tpu.memory_space<vmem>>, vector<8x32xf32>,
    }
    %c1_i32_9 = arith.constant 1 : i32
    %12 = arith.cmpi eq, %arg1, %c1_i32_9 : i32
    %13 = arith.extui %12 : i1 to i32
    %c0_i32_10 = arith.constant 0 : i32
    %14 = arith.cmpi ne, %13, %c0_i32_10 : i32
    scf.if %14 {
      %c0_11 = arith.constant 0 : index
      %c0_12 = arith.constant 0 : index
      %15 = vector.load %arg10[%c0_11, %c0_12] : memref<8x32xf32, #tpu.memory_space<vmem>>, vector<8x32xf32>
      %16 = arith.truncf %15 : vector<8x32xf32> to vector<8x32xbf16>
      %c0_13 = arith.constant 0 : index
      %c0_14 = arith.constant 0 : index
      %17 = vector.load %arg7[%c0_13, %c0_14] : memref<32x5xbf16, #tpu.memory_space<vmem>>, vector<32x5xbf16>
      %cst = arith.constant dense<0.000000e+00> : vector<8x5xf32>
      %18 = tpu.matmul %16, %17, %cst {dimension_numbers = #tpu.dot_dimension_numbers<[1], [0], [0], [1], [0, 0, 1, 1], [], []>} : vector<8x32xbf16>, vector<32x5xbf16>, vector<8x5xf32> -> vector<8x5xf32>
      %c0_15 = arith.constant 0 : index
      %c0_16 = arith.constant 0 : index
      %19 = vector.load %arg8[%c0_15, %c0_16] : memref<1x5xf32, #tpu.memory_space<vmem>>, vector<1x5xf32>
      %20 = vector.broadcast %19 : vector<1x5xf32> to vector<8x5xf32>
      %21 = arith.addf %18, %20 : vector<8x5xf32>
      %cst_17 = arith.constant 0.000000e+00 : f32
      %22 = vector.broadcast %cst_17 : f32 to vector<8x5xf32>
      %23 = arith.cmpf oge, %21, %22 : vector<8x5xf32>
      %cst_18 = arith.constant 0.00999999977 : f32
      %24 = vector.broadcast %cst_18 : f32 to vector<8x5xf32>
      %25 = arith.mulf %24, %21 : vector<8x5xf32>
      %26 = arith.select %23, %21, %25 : vector<8x5xi1>, vector<8x5xf32>
      %cst_19 = arith.constant dense<0xFF800000> : vector<8xf32>
      %27 = vector.multi_reduction <maximumf>, %26, %cst_19 [1] : vector<8x5xf32> to vector<8xf32>
      %28 = vector.shape_cast %27 : vector<8xf32> to vector<8x1xf32>
      %29 = vector.broadcast %28 : vector<8x1xf32> to vector<8x5xf32>
      %30 = arith.subf %26, %29 : vector<8x5xf32>
      %31 = math.exp %30 : vector<8x5xf32>
      %cst_20 = arith.constant dense<0.000000e+00> : vector<8xf32>
      %32 = vector.multi_reduction <add>, %31, %cst_20 [1] : vector<8x5xf32> to vector<8xf32>
      %33 = vector.shape_cast %32 : vector<8xf32> to vector<8x1xf32>
      %34 = vector.broadcast %33 : vector<8x1xf32> to vector<8x5xf32>
      %35 = arith.divf %31, %34 : vector<8x5xf32>
      %c0_21 = arith.constant 0 : index
      %c0_22 = arith.constant 0 : index
      %36 = vector.load %arg9[%c0_21, %c0_22] : memref<8x5xf32, #tpu.memory_space<vmem>>, vector<8x5xf32>
      tpu.vector_store %arg9[%c0_21, %c0_22], %35 {strides = array<i32>} : memref<8x5xf32, #tpu.memory_space<vmem>>, vector<8x5xf32>,
    } else {
    }
    return
  }
  func.func @transform_0(%arg0: i32, %arg1: i32, %arg2: memref<1xi32, #tpu.memory_space<smem>>) -> (i32, i32, i32) {
    %c0_i32 = arith.constant 0 : i32
    %c0_i32_0 = arith.constant 0 : i32
    return %arg1, %arg0, %c0_i32 : i32, i32, i32
  }
  func.func @transform_1(%arg0: i32, %arg1: i32, %arg2: memref<1xi32, #tpu.memory_space<smem>>) -> (i32, i32) {
    %c0_i32 = arith.constant 0 : i32
    %c0_i32_0 = arith.constant 0 : i32
    return %arg0, %c0_i32 : i32, i32
  }
  func.func @transform_2(%arg0: i32, %arg1: i32, %arg2: memref<1xi32, #tpu.memory_space<smem>>) -> (i32, i32) {
    %c0_i32 = arith.constant 0 : i32
    %c0_i32_0 = arith.constant 0 : i32
    %c0_i32_1 = arith.constant 0 : i32
    return %c0_i32, %c0_i32_0 : i32, i32
  }
  func.func @transform_3(%arg0: i32, %arg1: i32, %arg2: memref<1xi32, #tpu.memory_space<smem>>) -> (i32, i32) {
    %c0_i32 = arith.constant 0 : i32
    %c0_i32_0 = arith.constant 0 : i32
    %c0_i32_1 = arith.constant 0 : i32
    return %c0_i32, %c0_i32_0 : i32, i32
  }
  func.func @transform_4(%arg0: i32, %arg1: i32, %arg2: memref<1xi32, #tpu.memory_space<smem>>) -> (i32, i32) {
    %c0_i32 = arith.constant 0 : i32
    %c0_i32_0 = arith.constant 0 : i32
    %c0_i32_1 = arith.constant 0 : i32
    return %c0_i32, %c0_i32_0 : i32, i32
  }
  func.func @transform_5(%arg0: i32, %arg1: i32, %arg2: memref<1xi32, #tpu.memory_space<smem>>) -> (i32, i32) {
    %c0_i32 = arith.constant 0 : i32
    %c0_i32_0 = arith.constant 0 : i32
    %c0_i32_1 = arith.constant 0 : i32
    return %c0_i32, %c0_i32_0 : i32, i32
  }
  func.func @transform_6(%arg0: i32, %arg1: i32, %arg2: memref<1xi32, #tpu.memory_space<smem>>) -> (i32, i32) {
    %c0_i32 = arith.constant 0 : i32
    %c0_i32_0 = arith.constant 0 : i32
    return %arg0, %c0_i32 : i32, i32
  }
}

</mosaic_0001>

<bundles_post_ra>
// kernel: lstm_classify_forward.1
= control target key start
LH: loop header
LB: loop body
LE: loop exit
PB: predicated region body
PF: predicated region fallthrough
CT: control target
= control target key end

     0   :  { %s813_s26 = smov 0   ;;  %s815_s27 = smov 0   ;;  %s912_s0 = inlined_call_operand.<no memory space> [shape: s32[1], index: 0, kind: input, shape index: {}]   ;;  %s913_s1 = inlined_call_operand.vmem [shape: bf16[8,8,128], index: 1, kind: input, shape index: {}]   ;;  %s914_s2 = inlined_call_operand.vmem [shape: s32[8,1], index: 2, kind: input, shape index: {}]   ;;  %s915_s3 = inlined_call_operand.vmem [shape: f32[1,128], index: 3, kind: input, shape index: {}]   ;;  %s916_s4 = inlined_call_operand.vmem [shape: bf16[32,128], index: 4, kind: input, shape index: {}]   ;;  %s917_s5 = inlined_call_operand.vmem [shape: bf16[32,5], index: 5, kind: input, shape index: {}]   ;;  %s918_s6 = inlined_call_operand.vmem [shape: f32[1,5], index: 6, kind: input, shape index: {}]   ;;  %s919_s7 = inlined_call_operand.vmem [shape: f32[8,5], index: 7, kind: output, shape index: {}]  }
   0x1   :  { %12 = sst [smem:[#allocation5]] %s912_s0  ;;  %s817_s28 = smov 0  }
   0x2 LB: > { %s27_s0 = sadd.s32 1, %s751_s27  ;;  %p621_p0 = scmp.ge.s32.totalorder %s755_s28, 1  ;;  %s755_s28 = sphi %s817_s28, %s18_s28   ;;  %s751_s27 = sphi %s815_s27, %s921_s27   ;;  %s747_s26 = sphi %s813_s26, %s920_s26  }
   0x3   : > { %p28_p1 = scmp.ge.s32.totalorder %s27_s0, 2  ;;  %p241_p2 = scmp.lt.s32.totalorder %s755_s28, 3 }
   0x5   : > { %s923_s0 = smov (%p28_p1, %s27_s0), 0  ;;  %p242_p3 = pnand %p621_p0, %p241_p2 }
   0x6   : > { %s834_s29 = sshll.u32 (!%p242_p3), %s747_s26, 2  ;;  %p624_p5 = scmp.ne.s32.totalorder (!%p242_p3), %s747_s26, 0 }
   0x7   : > { %245 = sbr.rel (%p242_p3) target bundleno = 1265 (0x4f1), region = 44  ;;  %p278_p4 = scmp.lt.s32.totalorder (!%p242_p3), %s834_s29, 7 }
   0xc   : > { %s279_s30 = scalar_select %p278_p4, %s834_s29, 7 }
   0xd   : > { %298 = sbr.rel (%p624_p5) target bundleno = 20 (0x14), region = 48 }
   0xe   : > { %s623_s8 = sshll.u32 %s279_s30, 2 }
   0xf   : > { %s841_s11 = scalar_lea.vmem %s913_s1, %s623_s8 }
  0x12   : > { %vm299_vm0 = vcmask 261120   ;;  %v761_v0 = vmov 0.0  }
  0x13   : > { %300 = vst.msk [vmem:[#allocation2] sm:$0xff] %vm299_vm0, %v761_v0  ;;  %301 = vst.msk [vmem:[#allocation3] sm:$0xff] %vm299_vm0, %v761_v0 }
  0x14 PF: > { %v847_v1 = vld [vmem:[%s914_s2] sm:$0xff]  ;;  %s305_s16 = sld [smem:[#allocation5]] }
  0x15   : > { %v852_v2 = vld [vmem:[%s915_s3] ss:$0 sm:$0xff] }
  0x1a   : > { %s306_s17 = ssub.s32 %s305_s16, %s834_s29 }
  0x1b   : > { %p307_p6 = scmp.gt.s32.totalorder %s306_s17, 0  ;;  %p626_p7 = scmp.lt.s32.totalorder %s306_s17, 4 }
  0x1d   : > { %s925_s17 = smov (!%p307_p6, %s306_s17), 0 }
  0x1e   : > { %s927_s17 = smov (!%p626_p7, %s925_s17), 4 }
  0x1f   : > { %p631_p8 = scmp.le.s32.totalorder %s927_s17, 0 }
  0x20   : > { %s858_s18 = smov (!%p631_p8), 0  }
  0x21   : > { %579 = sbr.rel (%p631_p8) target bundleno = 738 (0x2e2), region = 87 }
  0x26 LB: >> { %v713_v3 = vld [vmem:[%s916_s4 + $0x8] sm:$0xff]   ;;  %v762_v4 = vmov 0.0   ;;  %v714_v5 = vld [vmem:[%s916_s4] sm:$0xff]   ;;  %vm763_vm1 = vmmov 0   ;;  %vm347_vm2 = vcmask 261120   ;;  %s632_s23 = sshll.u32 %s759_s18, 2  ;;  %s420_s8 = sadd.s32 %s759_s18, %s834_s29  ;;  %s759_s18 = sphi %s858_s18, %s314_s18  }
  0x27   : >> { %654 = vmatprep.subr.bf16.mxu0 %v762_v4  ;;  %658 = vmatprep.mubr.msk.bf16.mxu0 %vm763_vm1, %v762_v4  ;;  %v317_v6 = vld [vmem:[#allocation2] sm:$0xff]  ;;  %s320_s24 = scalar_lea.vmem %s841_s11, %s632_s23  ;;  %v764_v16 = vmov 0   ;;  %s765_s25 = smov 64   ;;  %v318_v18 = vld [vmem:[#allocation3] sm:$0xff]  ;;  %v421_v22 = vstv %s420_s8 }
  0x28   : >> { %655 = vmatpush3.bf16.msra.mxu0 %v713_v3  ;;  %v330_v7 = vpack.c.bf16 %v317_v6, %v317_v6  ;;  %v321_v8 = vld [vmem:[%s320_s24] sm:$0xf]  ;;  %711 = vset.pattern.permute.xlu1 %v764_v16  ;;  %s766_s30 = smov 32   ;;  %vm422_vm3 = vcmp.lt.s32.totalorder %v421_v22, %v847_v1  ;;  %s767_s9 = smov 96  }
  0x29   : >> { %656 = vmatprep.subr.bf16.mxu0 %v762_v4  ;;  %v322_v9 = vunpack.c.l.bf16 %v321_v8  ;;  %712 = vset.pattern.permute.xlu0 %v764_v16  ;;  %v423_v26 = vsel %vm422_vm3, 1, %v764_v16  ;;  %s314_s18 = sadd.s32 1, %s759_s18  }
  0x2a   : >> { %p313_p9 = scmp.ge.s32.totalorder %s314_s18, %s927_s17 }
  0x2b   : >> { %v329_v10 = vadd.f32 %v852_v2, %v322_v9 }
  0x2c   : >> { %657 = vmatpush3.bf16.msra.mxu0 %v714_v5 }
  0x2f   : >> { %659 = vmatmul.mubr.msk.bf16.vlgmr.msra.gmra.mxu0 %vm347_vm2, %v330_v7 }
  0xef   : >> { %v385_v11 = vpop.f32.mrf.mxu0 }
  0xf0   : >> { %v391_v12 = vadd.f32 %v385_v11, %v329_v10 }
  0xf1   : >> { %v660_v13 = vpop.f32.mrf.mxu0 }
  0xf2   : >> { %715 = vtanh.f32 %v391_v12  ;;  %v637_v19 = vmul.f32 -1.442695, %v391_v12 }
  0xf3   : >> { %v388_v14 = vpop.f32.mrf.mxu0 }
  0xf4   : >> { %717 = vpow2.f32 %v637_v19 }
  0xf5   : >> { %v661_v15 = vpop.f32.mrf.mxu0 }
  0xff   : >> { %v716_v17 = vpop.eup %715 }
 0x100   : >> { %405 = vrot.lane.b32.xlu0 %v716_v17, %s765_s25 }
 0x101   : >> { %v718_v20 = vpop.eup %717 }
 0x102   : >> { %v395_v21 = vadd.f32 1.0, %v718_v20 }
 0x104   : >> { %400 = vrot.lane.b32.xlu0 %v318_v18, %s766_s30  ;;  %719 = vrcp.f32 %v395_v21 }
 0x111   : >> { %v720_v23 = vpop.eup %719 }
 0x172   : >> { %v406_v24 = vpop.permute.xlu0 %405 }
 0x173   : >> { %v408_v25 = vmul.f32 %v720_v23, %v406_v24 }
 0x175   : >> { %410 = vrot.lane.b32.xlu1 %v408_v25, %s766_s30 }
 0x176   : >> { %v401_v27 = vpop.permute.xlu0 %400 }
 0x177   : >> { %v403_v28 = vmul.f32 %v720_v23, %v401_v27 }
 0x179   : >> { %425 = vperm.xlu1 %711, %v423_v26  }
 0x17d   : >> { %429 = vrot.lane.b32.xlu1 %v317_v6, %s767_s9 }
 0x1e7   : >> { %v411_v29 = vpop.permute.xlu1 %410 }
 0x1e8   : >> { %v413_v30 = vadd.f32 %v411_v29, %v403_v28 }
 0x1ea   : >> { %721 = vtanh.f32 %v413_v30 }
 0x1f4   : >> { %v426_v31 = vpop.permute.xlu1 %425 }
 0x1f5   : >> { %vm427_vm4 = vcmp.eq.s32.totalorder %v426_v31, 1 }
 0x1f6   : >> { %v438_v32 = vsel %vm427_vm4, %v413_v30, %v401_v27 }
 0x1f7   : >> { %v722_v33 = vpop.eup %721  ;;  %440 = vrot.lane.b32.xlu1 %v438_v32, %s767_s9 }
 0x1f8   : >> { %416 = vrot.lane.b32.xlu0 %v722_v33, %s765_s25  ;;  %v430_v34 = vpop.permute.xlu1 %429 }
 0x269   : >> { %v441_v35 = vpop.permute.xlu1 %440 }
 0x26a   : >> { %443 = vst.msk [vmem:[#allocation3] sm:$0xff] %vm347_vm2, %v441_v35  ;;  %v417_v36 = vpop.permute.xlu0 %416 }
 0x26b   : >> { %v419_v37 = vmul.f32 %v720_v23, %v417_v36 }
 0x26d   : >> { %v432_v38 = vsel %vm427_vm4, %v419_v37, %v430_v34 }
 0x26e   : >> { %434 = vrot.lane.b32.xlu0 %v432_v38, %s766_s30 }
 0x2dd   : > { %316 = sbr.rel (!%p313_p9) target bundleno = 38 (0x26), region = 93 }
 0x2e0   : >> { %v435_v39 = vpop.permute.xlu0 %434 }
 0x2e1   : >> { %437 = vst.msk [vmem:[#allocation2] sm:$0xff] %vm347_vm2, %v435_v39 }
 0x2e2 PF: > { %p638_p10 = scmp.ne.s32.totalorder %s747_s26, 1 }
 0x2e4   : > { %447 = sbr.rel (%p638_p10) target bundleno = 1265 (0x4f1), region = 59 }
 0x2e9   : > { %v723_v40 = vld [vmem:[%s917_s5 + $0x8] sm:$0xff]   ;;  %v768_v41 = vmov 0.0   ;;  %v724_v42 = vld [vmem:[%s917_s5] sm:$0xff]   ;;  %vm769_vm5 = vmmov 0   ;;  %vm473_vm6 = vcmask 261120   ;;  %vm520_vm8 = vcmask 39936  }
 0x2ea   : > { %662 = vmatprep.subr.bf16.mxu0 %v768_v41  ;;  %666 = vmatprep.mubr.msk.bf16.mxu0 %vm769_vm5, %v768_v41  ;;  %v448_v43 = vld [vmem:[#allocation2] sm:$0xff] }
 0x2eb   : > { %663 = vmatpush3.bf16.msra.mxu0 %v723_v40  ;;  %v449_v44 = vpack.c.bf16 %v448_v43, %v448_v43  ;;  %v639_v45 = vld [vmem:[%s918_s6] ss:$0 sm:$0xff] }
 0x2ec   : > { %664 = vmatprep.subr.bf16.mxu0 %v768_v41 }
 0x2ef   : > { %665 = vmatpush3.bf16.msra.mxu0 %v724_v42 }
 0x2f2   : > { %667 = vmatmul.mubr.msk.bf16.vlgmr.msra.gmra.mxu0 %vm473_vm6, %v449_v44 }
 0x3b2   : > { %v511_v46 = vpop.f32.mrf.mxu0 }
 0x3b3   : > { %v512_v47 = vadd.f32 %v639_v45, %v511_v46 }
 0x3b4   : > { %v668_v48 = vpop.f32.mrf.mxu0 }
 0x3b5   : > { %v518_v49 = vmul.f32 0.01, %v512_v47  ;;  %vm517_vm7 = vcmp.ge.f32.partialorder %v512_v47, 0.0 }
 0x3b6   : > { %v514_v50 = vpop.f32.mrf.mxu0 }
 0x3b7   : > { %v519_v51 = vsel %vm517_vm7, %v512_v47, %v518_v49 }
 0x3b8   : > { %v669_v52 = vpop.f32.mrf.mxu0  ;;  %v521_v53 = vsel %vm520_vm8, %v519_v51, -inf }
 0x3b9   : > { %522 = vmax.xlane.f32.xlu0 %v521_v53 }
 0x442   : > { %v523_v54 = vpop.xlane.xlu0 %522 }
 0x443   : > { %v524_v55 = vsub.f32 %v519_v51, %v523_v54 }
 0x445   : > { %v525_v56 = vmul.f32 1.442695, %v524_v55 }
 0x447   : > { %725 = vpow2.f32 %v525_v56 }
 0x454   : > { %v726_v57 = vpop.eup %725 }
 0x455   : > { %v527_v58 = vsel %vm520_vm8, %v726_v57, 0.0 }
 0x456   : > { %528 = vadd.xlane.f32.xlu0 %v527_v58 }
 0x4df   : > { %v529_v59 = vpop.xlane.xlu0 %528 }
 0x4e0   : > { %727 = vrcp.f32 %v529_v59 }
 0x4ed   : > { %v728_v60 = vpop.eup %727 }
 0x4ee   : > { %v531_v61 = vmul.f32 %v728_v60, %v726_v57 }
 0x4f0   : > { %532 = vst.msk [vmem:[%s919_s7] sm:$0xff] %vm520_vm8, %v531_v61 }
 0x4f1 PF: > { %s18_s28 = sadd.s32 1, %s755_s28   ;;  %s920_s26 = smov %s751_s27 }
 0x4f2   : > { %p15_p11 = scmp.ge.s32.totalorder %s18_s28, 4   ;;  %s921_s27 = smov %s923_s0 }
 0x4f4   :  { %17 = sbr.rel (!%p15_p11) target bundleno = 2 (0x2), region = 104 }

</bundles_post_ra>
